<compile_context>
chip_gen: v7x
topology: tpu7x:2x2x1
jax: 0.10.0
libtpu: 0.0.40
codegen_flags: <defaults>
</compile_context>

<pallas_src>
import jax
import jax.numpy as jnp
from jax import lax
from jax.experimental import pallas as pl
from jax.experimental.pallas import tpu as pltpu


def _round_up(x, m):
    return ((x + m - 1) // m) * m


def _sublane(dtype):
    # minimum sublane multiple for the dtype's packed (sublane, 128) tile
    itemsize = jnp.dtype(dtype).itemsize
    return max(8, 32 // max(itemsize, 1))


def _largest_tile(dim, unit, cap):
    """Largest t = unit*d with d | (dim // unit) and t <= cap (dim is a multiple of unit)."""
    n = dim // unit
    best = unit
    for d in range(1, n + 1):
        if n % d == 0 and unit * d <= cap:
            best = unit * d
    return best


# ----------------------------- kernels -----------------------------

def _linear_kernel_small(x_ref, w_ref, b_ref, o_ref):
    # Whole problem in one VMEM block; w_ref keeps the original PyTorch [C, E] layout.
    acc = lax.dot_general(
        x_ref[...], w_ref[...],
        dimension_numbers=(((1,), (1,)), ((), ())),
        preferred_element_type=jnp.float32,
    )
    o_ref[...] = (acc + b_ref[...].astype(jnp.float32)).astype(o_ref.dtype)


def _linear_kernel_noacc(x_ref, w_ref, b_ref, o_ref):
    # Single k step covers all of E: no accumulator scratch / pl.when needed.
    acc = jnp.dot(x_ref[...], w_ref[...], preferred_element_type=jnp.float32)
    o_ref[...] = (acc + b_ref[...].astype(jnp.float32)).astype(o_ref.dtype)


def _linear_kernel_acc(x_ref, w_ref, b_ref, o_ref, acc_ref):
    k = pl.program_id(2)

    @pl.when(k == 0)
    def _():
        acc_ref[...] = jnp.zeros_like(acc_ref)

    acc_ref[...] += jnp.dot(x_ref[...], w_ref[...], preferred_element_type=jnp.float32)

    @pl.when(k == pl.num_programs(2) - 1)
    def _():
        o_ref[...] = (acc_ref[...] + b_ref[...].astype(jnp.float32)).astype(o_ref.dtype)


# ----------------------------- wrapper -----------------------------

_VMEM_TILE_BUDGET = 24 * 1024 * 1024   # target for double-buffered tile footprint
_VMEM_LIMIT = 48 * 1024 * 1024         # scoped-VMEM limit (safe on v5e/v6e/v7x)
_SMALL_PATH_BYTES = 4 * 1024 * 1024    # whole-problem-in-one-block threshold


def prepare_linear_params(weight, bias):
    """One-time packing of nn.Linear params (call once, reuse across forwards).

    weight: [C, E] (PyTorch layout), bias: [C].
    Builds a 128-aligned, transposed [E_pad, C_pad] weight copy + padded bias for the
    tiled kernel, and keeps the original arrays for the tiny-shape single-block path,
    so no per-call weight pad/transpose ever hits HBM.
    """
    C, E = weight.shape
    dtype = weight.dtype
    C_pad = _round_up(C, 128)
    E_pad = _round_up(E, 128)
    w_t = jnp.pad(weight, ((0, C_pad - C), (0, E_pad - E))).T      # [E_pad, C_pad], once
    bias2d = bias.reshape(1, C)
    bias_pad = jnp.pad(bias2d, ((0, 0), (0, C_pad - C)))
    return dict(weight=weight, bias2d=bias2d, w_t=w_t, bias_pad=bias_pad,
                C=C, E=E, C_pad=C_pad, E_pad=E_pad, dtype=dtype)


def linear_classifier_forward(x, params):
    """y = x @ weight.T + bias, with x cast to the weight dtype (nn.Linear semantics)."""
    dtype = params["dtype"]
    C, E = params["C"], params["E"]
    B, E_x = x.shape
    assert E_x == E, "embedding size mismatch"
    x = x.astype(dtype)                     # x = x.to(self.fc.weight.dtype)
    itemsize = jnp.dtype(dtype).itemsize

    # ---- tiny-problem path: one whole-array VMEM block, no padding, no grid ----
    small_bytes = itemsize * (B * E + C * E + C + B * C) + 4 * B * C
    if small_bytes <= _SMALL_PATH_BYTES:
        return pl.pallas_call(
            _linear_kernel_small,
            out_shape=jax.ShapeDtypeStruct((B, C), dtype),
        )(x, params["weight"], params["bias2d"])

    # ---- tiled path ----
    sub = _sublane(dtype)
    C_pad, E_pad = params["C_pad"], params["E_pad"]
    B_pad = _round_up(B, sub)

    # Batch tile: keep the whole batch in one tile when possible -> weight streamed once.
    tm_cap = 1024
    if B_pad <= tm_cap:
        tm = B_pad
    else:
        tm = _largest_tile(B_pad, sub, tm_cap)
        if tm < 256:                         # poor divisor structure: accept a bit of batch pad
            tm = tm_cap
            B_pad = _round_up(B_pad, tm)

    # Class tile: largest 128-multiple divisor of C_pad, capped at 512.
    tn = _largest_tile(C_pad, 128, 512)
    # v7x has 2 TensorCores: guarantee >= 2 tiles across the parallel axes when possible.
    if (B_pad // tm) == 1 and (C_pad // tn) == 1 and C_pad >= 256:
        tn = _largest_tile(C_pad, 128, C_pad // 2)

    # Contraction tile: as large as the VMEM budget allows, and a divisor of E_pad.
    bytes_left = _VMEM_TILE_BUDGET - tm * tn * (2 * itemsize + 4)
    tk_cap = max(128, bytes_left // (2 * itemsize * (tm + tn)))
    tk = _largest_tile(E_pad, 128, min(2048, tk_cap))

    x_p = x
    if (B_pad, E_pad) != (B, E):
        x_p = jnp.pad(x, ((0, B_pad - B), (0, E_pad - E)))

    gi, gj, gk = B_pad // tm, C_pad // tn, E_pad // tk

    if gk == 1:
        out = pl.pallas_call(
            _linear_kernel_noacc,
            out_shape=jax.ShapeDtypeStruct((B_pad, C_pad), dtype),
            grid_spec=pltpu.PrefetchScalarGridSpec(
                num_scalar_prefetch=0,
                grid=(gi, gj),
                in_specs=[
                    pl.BlockSpec((tm, E_pad), lambda i, j: (i, 0)),
                    pl.BlockSpec((E_pad, tn), lambda i, j: (0, j)),
                    pl.BlockSpec((1, tn), lambda i, j: (0, j)),
                ],
                out_specs=pl.BlockSpec((tm, tn), lambda i, j: (i, j)),
            ),
            compiler_params=pltpu.CompilerParams(
                dimension_semantics=("parallel", "parallel"),
                vmem_limit_bytes=_VMEM_LIMIT,
            ),
        )(x_p, params["w_t"], params["bias_pad"])
    else:
        out = pl.pallas_call(
            _linear_kernel_acc,
            out_shape=jax.ShapeDtypeStruct((B_pad, C_pad), dtype),
            grid_spec=pltpu.PrefetchScalarGridSpec(
                num_scalar_prefetch=0,
                grid=(gi, gj, gk),
                in_specs=[
                    pl.BlockSpec((tm, tk), lambda i, j, k: (i, k)),
                    pl.BlockSpec((tk, tn), lambda i, j, k: (k, j)),
                    pl.BlockSpec((1, tn), lambda i, j, k: (0, j)),
                ],
                out_specs=pl.BlockSpec((tm, tn), lambda i, j, k: (i, j)),
                scratch_shapes=[pltpu.VMEM((tm, tn), jnp.float32)],
            ),
            compiler_params=pltpu.CompilerParams(
                dimension_semantics=("parallel", "parallel", "arbitrary"),
                vmem_limit_bytes=_VMEM_LIMIT,
            ),
        )(x_p, params["w_t"], params["bias_pad"])

    return out[:B, :C]


if __name__ == "__main__":
    key = jax.random.PRNGKey(0)

    # ---- 1) Nominal module shapes (tiny single-block path) ----
    batch, embedding_size, num_classes = 8, 32, 16
    kx, kw, kb = jax.random.split(key, 3)
    bound = 1.0 / jnp.sqrt(jnp.float32(embedding_size))
    weight = jax.random.uniform(kw, (num_classes, embedding_size), jnp.float32, -bound, bound)
    bias = jax.random.uniform(kb, (num_classes,), jnp.float32, -bound, bound)
    x = jax.random.normal(kx, (batch, embedding_size), jnp.float32)

    params = prepare_linear_params(weight, bias)
    y = linear_classifier_forward(x, params)
    jax.block_until_ready(y)
    y_ref = x @ weight.T + bias
    assert y.shape == (batch, num_classes)
    assert jnp.allclose(y, y_ref, atol=1e-5, rtol=1e-5)

    # ---- 2) Ragged mid-size shapes (tiled path, single k step, no accumulator) ----
    B2, E2, C2 = 520, 1030, 300
    k2x, k2w, k2b = jax.random.split(jax.random.PRNGKey(1), 3)
    w2 = jax.random.normal(k2w, (C2, E2), jnp.float32) * 0.02
    b2 = jax.random.normal(k2b, (C2,), jnp.float32) * 0.02
    x2 = jax.random.normal(k2x, (B2, E2), jnp.float32)
    p2 = prepare_linear_params(w2, b2)
    y2 = linear_classifier_forward(x2, p2)
    jax.block_until_ready(y2)
    y2_ref = x2 @ w2.T + b2
    assert y2.shape == (B2, C2)
    assert jnp.allclose(y2, y2_ref, atol=1e-2, rtol=1e-2)

    # ---- 3) Larger embedding (tiled path, multi-step k accumulation) ----
    B3, E3, C3 = 256, 4200, 300
    k3x, k3w, k3b = jax.random.split(jax.random.PRNGKey(2), 3)
    w3 = jax.random.normal(k3w, (C3, E3), jnp.float32) * 0.02
    b3 = jax.random.normal(k3b, (C3,), jnp.float32) * 0.02
    x3 = jax.random.normal(k3x, (B3, E3), jnp.float32)
    p3 = prepare_linear_params(w3, b3)
    y3 = linear_classifier_forward(x3, p3)
    jax.block_until_ready(y3)
    y3_ref = x3 @ w3.T + b3
    assert y3.shape == (B3, C3)
    assert jnp.allclose(y3, y3_ref, atol=1e-2, rtol=1e-2)

    # ---- 4) bf16 weight/activation path (halves the dominant weight HBM stream) ----
    w4 = w2.astype(jnp.bfloat16)
    b4 = b2.astype(jnp.bfloat16)
    p4 = prepare_linear_params(w4, b4)
    y4 = linear_classifier_forward(x2, p4)      # x cast to bf16 inside, per module semantics
    jax.block_until_ready(y4)
    y4_ref = (x2.astype(jnp.bfloat16).astype(jnp.float32) @ w4.astype(jnp.float32).T
              + b4.astype(jnp.float32))
    assert y4.shape == (B2, C2)
    assert y4.dtype == jnp.bfloat16
    assert jnp.allclose(y4.astype(jnp.float32), y4_ref, atol=3e-2, rtol=3e-2)

    print("KERNEL_OK")
</pallas_src>

<mosaic_0001>
module attributes {stable_mosaic.version = 11 : i64} {
  func.func @_linear_kernel_small(%arg0: memref<8x32xf32, #tpu.memory_space<vmem>>, %arg1: memref<16x32xf32, #tpu.memory_space<vmem>>, %arg2: memref<1x16xf32, #tpu.memory_space<vmem>>, %arg3: memref<8x16xf32, #tpu.memory_space<vmem>>) attributes {dimension_semantics = [], scalar_prefetch = 0 : i64, scratch_operands = 0 : i64, tpu.core_type = #tpu.core_type<tc>} {
    %c0 = arith.constant 0 : index
    %c0_0 = arith.constant 0 : index
    %0 = vector.load %arg0[%c0, %c0_0] : memref<8x32xf32, #tpu.memory_space<vmem>>, vector<8x32xf32>
    %c0_1 = arith.constant 0 : index
    %c0_2 = arith.constant 0 : index
    %1 = vector.load %arg1[%c0_1, %c0_2] : memref<16x32xf32, #tpu.memory_space<vmem>>, vector<16x32xf32>
    %cst = arith.constant dense<0.000000e+00> : vector<8x16xf32>
    %2 = tpu.matmul %0, %1, %cst {dimension_numbers = #tpu.dot_dimension_numbers<[1], [1], [0], [0], [0, 0, 1, 0], [], []>} : vector<8x32xf32>, vector<16x32xf32>, vector<8x16xf32> -> vector<8x16xf32>
    %c0_3 = arith.constant 0 : index
    %c0_4 = arith.constant 0 : index
    %3 = vector.load %arg2[%c0_3, %c0_4] : memref<1x16xf32, #tpu.memory_space<vmem>>, vector<1x16xf32>
    %4 = vector.broadcast %3 : vector<1x16xf32> to vector<8x16xf32>
    %5 = arith.addf %2, %4 : vector<8x16xf32>
    %c0_5 = arith.constant 0 : index
    %c0_6 = arith.constant 0 : index
    %6 = vector.load %arg3[%c0_5, %c0_6] : memref<8x16xf32, #tpu.memory_space<vmem>>, vector<8x16xf32>
    tpu.vector_store %arg3[%c0_5, %c0_6], %5 {strides = array<i32>} : memref<8x16xf32, #tpu.memory_space<vmem>>, vector<8x16xf32>,
    return
  }
}

</mosaic_0001>

<bundles_post_ra>
// kernel: tpu_custom_call.1
= control target key start
LH: loop header
LB: loop body
LE: loop exit
PB: predicated region body
PF: predicated region fallthrough
CT: control target
= control target key end

     0   :  { %8 = vsyncpa [#allocation3], 0  ;;  %s321_s0 = inlined_call_operand.hbm [shape: f32[8,32], index: 0, kind: input, shape index: {}]   ;;  %s322_s1 = inlined_call_operand.hbm [shape: f32[16,32], index: 1, kind: input, shape index: {}]   ;;  %s323_s2 = inlined_call_operand.vmem [shape: f32[1,16], index: 2, kind: input, shape index: {}]   ;;  %s324_s3 = inlined_call_operand.hbm [shape: f32[8,16], index: 3, kind: output, shape index: {}]  }
   0x1   :  { %9 = vsyncpa [#allocation6], 0 }
   0x2   :  { %10 = vsyncpa [#allocation4], 0  ;;  %s247_s12 = smov [#allocation2]   ;;  %s248_s14 = smov [#allocation5]  }
   0x3   :  { %s17_s13 = sshll.u32 %s247_s12, 4  ;;  %s26_s15 = sshll.u32 %s248_s14, 4  ;;  %s18_s13 = int_to_ptr.vmem [resolvable:$true] %s17_s13  ;;  %s275_s15 = int_to_ptr.vmem [resolvable:$true] %s26_s15 }
   0x4   :  { %s175_s18 = scalar_lea.hbm %s321_s0, 128 }
   0x5   :  { %p176_p0 = scmp.ne.s32.totalorder %s321_s0, %s175_s18  ;;  %p179_p1 = scmp.lt.u32.totalorder %s175_s18, %s321_s0 }
   0x7   :  { %p181_p2 = pnand %p179_p1, %p176_p0 }
   0x9   :  { %184 = shalt.err (!%p181_p2)
}
   0xa   :  { %s185_s23 = scalar_lea.vmem %s18_s13, 128  ;;  %p190_p4 = scmp.lt.s32.totalorder %s18_s13, %s18_s13 }
   0xb   :  { %p186_p3 = scmp.ne.s32.totalorder %s18_s13, %s185_s23  ;;  %p191_p5 = scmp.lt.s32.totalorder %s185_s23, %s185_s23 }
   0xd   :  { %p192_p6 = por %p191_p5, %p190_p4 }
   0xf   :  { %p193_p7 = pnand %p192_p6, %p186_p3 }
  0x11   :  { %196 = shalt.err (!%p193_p7)
}
  0x12   :  { %20 = dma.hbm_to_vmem [thread:$0]  %s321_s0, 128, %s18_s13, [#allocation3]  }
  0x13   :  { %s197_s28 = scalar_lea.hbm %s322_s1, 256 }
  0x14   :  { %p198_p8 = scmp.ne.s32.totalorder %s322_s1, %s197_s28  ;;  %p201_p9 = scmp.lt.u32.totalorder %s197_s28, %s322_s1 }
  0x16   :  { %p203_p10 = pnand %p201_p9, %p198_p8 }
  0x18   :  { %206 = shalt.err (!%p203_p10)
}
  0x19   :  { %s207_s6 = scalar_lea.vmem %s275_s15, 256  ;;  %p212_p12 = scmp.lt.s32.totalorder %s275_s15, %s275_s15 }
  0x1a   :  { %p208_p11 = scmp.ne.s32.totalorder %s275_s15, %s207_s6  ;;  %p213_p13 = scmp.lt.s32.totalorder %s207_s6, %s207_s6 }
  0x1c   :  { %p214_p0 = por %p213_p13, %p212_p12 }
  0x1e   :  { %p215_p1 = pnand %p214_p0, %p208_p11 }
  0x20   :  { %218 = shalt.err (!%p215_p1)
}
  0x21   :  { %s249_s0 = smov 128   ;;  %s250_s7 = smov 8  }
  0x22   :  { %32 = dma.hbm_to_vmem [thread:$0]  %s322_s1, 256, %s275_s15, [#allocation6], %s249_s0, %s249_s0, %s250_s7  }
  0x23   :  { %241 = dma.done.wait [#allocation3], 128  }
  0x24   :  { %242 = vsyncadd [#allocation3], 4294967168 }
  0x25   :  { %243 = dma.done.wait [#allocation6], 256  }
  0x26   :  { %244 = vsyncadd [#allocation6], 4294967040  ;;  %v251_v0 = vmov 0.0|0.0   ;;  %vm252_vm0 = vmmov 0   ;;  %v253_v1 = vmov 0.0   ;;  %vm51_vm1 = vcmask 261120  }
  0x27   :  { %163 = vmatprep.subr.bf16.mxu0 %v251_v0  ;;  %160 = vmatprep.mubr.msk.f32.mxu0 %vm252_vm0, %v253_v1  ;;  %v42_v2 = vld [vmem:[#allocation5] sm:$0xff]  ;;  %v43_v3 = vld [vmem:[#allocation5 + $0x8] sm:$0xff]  ;;  %vm165_vm2 = vmpackc.low %vm51_vm1, %vm51_vm1  ;;  %s254_s1 = smov [#allocation7]   ;;  %vm131_vm3 = vcmask 130048  }
  0x28   :  { %v164_v4 = vpack.c.bf16 %v43_v3, %v42_v2  ;;  %v41_v5 = vld [vmem:[#allocation2] sm:$0xff]  ;;  %s139_s12 = sshll.u32 %s254_s1, 4  ;;  %s140_s12 = int_to_ptr.vmem [resolvable:$true] %s139_s12 }
  0x29   :  { %v149_v6 = vld [vmem:[%s323_s2] ss:$0 sm:$0xff]  ;;  %s219_s13 = scalar_lea.vmem %s140_s12, 128  ;;  %p224_p3 = scmp.lt.s32.totalorder %s140_s12, %s140_s12 }
  0x2a   :  { %166 = vmatpush3.bf16.xpose.msk.msra.mxu0 %vm165_vm2, %v164_v4  ;;  %p220_p2 = scmp.ne.s32.totalorder %s140_s12, %s219_s13  ;;  %p225_p4 = scmp.lt.s32.totalorder %s219_s13, %s219_s13 }
  0x2c   :  { %p226_p5 = por %p225_p4, %p224_p3 }
  0x2e   :  { %p227_p6 = pnand %p226_p5, %p220_p2 }
  0x31   :  { %161 = vmatmul.mubr.msk.f32.vlgmr.msra.gmra.mrb[0].mxu0 %vm51_vm1, %v41_v5 }
 0x104   :  { %v127_v7 = vpop.f32.mrb[0].mxu0 }
 0x105   :  { %v128_v8 = vadd.f32 %v149_v6, %v127_v7  ;;  %v162_v9 = vpop.f32.mrb[1].mxu0 }
 0x107   :  { %132 = vst.msk [vmem:[#allocation7] sm:$0xff] %vm131_vm3, %v128_v8 }
 0x108   :  { %230 = shalt.err (!%p227_p6)
}
 0x109   :  { %s231_s16 = scalar_lea.hbm %s324_s3, 128 }
 0x10a   :  { %p232_p7 = scmp.ne.s32.totalorder %s324_s3, %s231_s16  ;;  %p235_p8 = scmp.lt.u32.totalorder %s231_s16, %s324_s3 }
 0x10c   :  { %p237_p9 = pnand %p235_p8, %p232_p7 }
 0x10e   :  { %240 = shalt.err (!%p237_p9)
}
 0x10f   :  { %142 = dma.vmem_to_hbm [thread:$0]  %s140_s12, 128, %s324_s3, [#allocation4]  }
 0x110   :  { %245 = dma.done.wait [#allocation4], 128  }
 0x111   :  { %246 = vsyncadd [#allocation4], 4294967168 }
 0x112   :  { %146 = vsyncpa [#allocation3], 1 }
 0x113   :  { %147 = vsyncpa [#allocation6], 1 }
 0x114   :  { %148 = vsyncpa [#allocation4], 1 }

</bundles_post_ra>
